<compile_context>
chip_gen: v7x
topology: tpu7x:2x2x1
jax: 0.10.0
libtpu: 0.0.40
codegen_flags: <defaults>
</compile_context>

<pallas_src>
import jax
import jax.numpy as jnp
from jax.experimental import pallas as pl
from jax.experimental.pallas import tpu as pltpu


def _round_up(x, m):
    return ((x + m - 1) // m) * m


# --------------------------------------------------------------------------
# Pallas kernel: out[b, 0] = sum_k |e1[b,k] - e2[b,k]| * w[0,k]  + bias
# --------------------------------------------------------------------------
def _finger_identity_kernel(e1_ref, e2_ref, w_ref, b_ref, o_ref):
    e1 = e1_ref[...].astype(jnp.float32)                    # native dtype in HBM,
    e2 = e2_ref[...].astype(jnp.float32)                    # f32 math in VMEM
    dis = jnp.abs(e1 - e2)                                  # (tm, K)  VPU
    prod = dis * w_ref[...]                                 # broadcast (1, K)
    acc = jnp.sum(prod, axis=-1, keepdims=True)             # (tm, 1)  XLU reduce
    o_ref[...] = (acc + b_ref[0, 0]).astype(o_ref.dtype)


def finger_identity_forward(embd1, embd2, weight, bias, *, tm_max=2048):
    """embd1, embd2: (B, 256); weight: (1, 256) (PyTorch Linear.weight); bias: (1,)."""
    B, K = embd1.shape
    assert embd2.shape == (B, K)
    assert weight.shape[-1] == K
    assert K % 128 == 0, "hidden dim must be lane-aligned (it is 256 here)"

    # Row-tile selection:
    #  * multiple of 8 (sublane granularity) so the (8,128) rule holds even on
    #    the ragged last block,
    #  * capped at tm_max (VMEM / per-step-overhead tradeoff),
    #  * for larger B, capped at ~B/2 so the grid has >= 2 "parallel" steps and
    #    v7x's two TensorCores both get work.
    if B <= 8:
        tm = _round_up(B, 8)
    else:
        tm = min(tm_max, _round_up(pl.cdiv(B, 2), 8))
    grid = (pl.cdiv(B, tm),)

    w = weight.astype(jnp.float32).reshape(1, K)
    b = bias.astype(jnp.float32).reshape(1, 1)

    out = pl.pallas_call(
        _finger_identity_kernel,
        out_shape=jax.ShapeDtypeStruct((B, 1), embd1.dtype),
        grid=grid,
        in_specs=[
            pl.BlockSpec((tm, K), lambda i: (i, 0)),            # embd1 row tile
            pl.BlockSpec((tm, K), lambda i: (i, 0)),            # embd2 row tile
            pl.BlockSpec((1, K), lambda i: (0, 0)),             # weight, resident
            pl.BlockSpec(memory_space=pltpu.MemorySpace.SMEM),  # bias scalar
        ],
        out_specs=pl.BlockSpec((tm, 1), lambda i: (i, 0)),
        compiler_params=pltpu.CompilerParams(
            dimension_semantics=("parallel",),
            # 2 inputs x 2 bufs x tm*K*itemsize fits easily in 32 MiB up to
            # tm=2048 f32 (8 MiB) / tm=4096 bf16; raised explicitly so v5e's
            # 16 MiB default scoped limit is never the constraint.
            vmem_limit_bytes=32 * 1024 * 1024,
        ),
    )(embd1, embd2, w, b)
    return out


# --------------------------------------------------------------------------
if __name__ == "__main__":
    key = jax.random.PRNGKey(0)
    k1, k2, kw, kb = jax.random.split(key, 4)

    B, D = 2, 256                                    # nn.Linear(256, 1) requires D=256
    embd1 = jax.random.normal(k1, (B, D), jnp.float32)
    embd2 = jax.random.normal(k2, (B, D), jnp.float32)

    bound = 1.0 / (D ** 0.5)                          # PyTorch Linear default init range
    weight = jax.random.uniform(kw, (1, D), jnp.float32, -bound, bound)
    bias = jax.random.uniform(kb, (1,), jnp.float32, -bound, bound)

    out = finger_identity_forward(embd1, embd2, weight, bias)
    jax.block_until_ready(out)

    ref = jnp.abs(embd1 - embd2) @ weight.T + bias
    assert out.shape == (B, 1), out.shape
    assert jnp.allclose(out, ref, atol=1e-5, rtol=1e-5), (out, ref)

    # Extra sanity check: ragged multi-step grid (B not a multiple of tm).
    B2 = 300
    e1b = jax.random.normal(k1, (B2, D), jnp.float32)
    e2b = jax.random.normal(k2, (B2, D), jnp.float32)
    out2 = finger_identity_forward(e1b, e2b, weight, bias)
    jax.block_until_ready(out2)
    ref2 = jnp.abs(e1b - e2b) @ weight.T + bias
    assert out2.shape == (B2, 1), out2.shape
    assert jnp.allclose(out2, ref2, atol=1e-4, rtol=1e-5)

    print("KERNEL_OK")
</pallas_src>

<mosaic_0001>
module attributes {stable_mosaic.version = 11 : i64} {
  func.func @_finger_identity_kernel(%arg0: i32, %arg1: memref<8x256xf32, #tpu.memory_space<vmem>>, %arg2: memref<8x256xf32, #tpu.memory_space<vmem>>, %arg3: memref<1x256xf32, #tpu.memory_space<vmem>>, %arg4: memref<1x1xf32, #tpu.memory_space<smem>>, %arg5: memref<8x1xf32, #tpu.memory_space<vmem>>) attributes {dimension_semantics = [#tpu.dimension_semantics<parallel>], iteration_bounds = array<i64: 1>, scalar_prefetch = 0 : i64, scratch_operands = 0 : i64, tpu.core_type = #tpu.core_type<tc>, window_params = [{transform_indices = @transform_0, window_bounds = array<i64: 8, 256>}, {transform_indices = @transform_1, window_bounds = array<i64: 8, 256>}, {pipeline_mode = #tpu.pipeline_mode<synchronous>, transform_indices = @transform_2, window_bounds = array<i64: 1, 256>}, {transform_indices = @transform_3, window_bounds = array<i64: 1, 1>}, {transform_indices = @transform_4, window_bounds = array<i64: 8, 1>}]} {
    %c0 = arith.constant 0 : index
    %c0_0 = arith.constant 0 : index
    %0 = vector.load %arg1[%c0, %c0_0] : memref<8x256xf32, #tpu.memory_space<vmem>>, vector<8x256xf32>
    %c0_1 = arith.constant 0 : index
    %c0_2 = arith.constant 0 : index
    %1 = vector.load %arg2[%c0_1, %c0_2] : memref<8x256xf32, #tpu.memory_space<vmem>>, vector<8x256xf32>
    %2 = arith.subf %0, %1 : vector<8x256xf32>
    %3 = math.absf %2 : vector<8x256xf32>
    %c0_3 = arith.constant 0 : index
    %c0_4 = arith.constant 0 : index
    %4 = vector.load %arg3[%c0_3, %c0_4] : memref<1x256xf32, #tpu.memory_space<vmem>>, vector<1x256xf32>
    %5 = vector.broadcast %4 : vector<1x256xf32> to vector<8x256xf32>
    %6 = arith.mulf %3, %5 : vector<8x256xf32>
    %cst = arith.constant dense<0.000000e+00> : vector<8xf32>
    %7 = vector.multi_reduction <add>, %6, %cst [1] : vector<8x256xf32> to vector<8xf32>
    %8 = vector.shape_cast %7 : vector<8xf32> to vector<8x1xf32>
    %c0_5 = arith.constant 0 : index
    %c0_6 = arith.constant 0 : index
    %9 = memref.load %arg4[%c0_5, %c0_6] : memref<1x1xf32, #tpu.memory_space<smem>>
    %10 = vector.broadcast %9 : f32 to vector<8x1xf32>
    %11 = arith.addf %8, %10 : vector<8x1xf32>
    %c0_7 = arith.constant 0 : index
    %c0_8 = arith.constant 0 : index
    %12 = vector.load %arg5[%c0_7, %c0_8] : memref<8x1xf32, #tpu.memory_space<vmem>>, vector<8x1xf32>
    tpu.vector_store %arg5[%c0_7, %c0_8], %11 {strides = array<i32>} : memref<8x1xf32, #tpu.memory_space<vmem>>, vector<8x1xf32>,
    return
  }
  func.func @transform_0(%arg0: i32) -> (i32, i32) {
    %c0_i32 = arith.constant 0 : i32
    %c0_i32_0 = arith.constant 0 : i32
    return %arg0, %c0_i32 : i32, i32
  }
  func.func @transform_1(%arg0: i32) -> (i32, i32) {
    %c0_i32 = arith.constant 0 : i32
    %c0_i32_0 = arith.constant 0 : i32
    return %arg0, %c0_i32 : i32, i32
  }
  func.func @transform_2(%arg0: i32) -> (i32, i32) {
    %c0_i32 = arith.constant 0 : i32
    %c0_i32_0 = arith.constant 0 : i32
    %c0_i32_1 = arith.constant 0 : i32
    return %c0_i32, %c0_i32_0 : i32, i32
  }
  func.func @transform_3(%arg0: i32) -> (i32, i32) {
    %c0_i32 = arith.constant 0 : i32
    %c0_i32_0 = arith.constant 0 : i32
    %c0_i32_1 = arith.constant 0 : i32
    return %c0_i32, %c0_i32_0 : i32, i32
  }
  func.func @transform_4(%arg0: i32) -> (i32, i32) {
    %c0_i32 = arith.constant 0 : i32
    %c0_i32_0 = arith.constant 0 : i32
    return %arg0, %c0_i32 : i32, i32
  }
}

</mosaic_0001>

<bundles_post_ra>
// kernel: tpu_custom_call.1
= control target key start
LH: loop header
LB: loop body
LE: loop exit
PB: predicated region body
PF: predicated region fallthrough
CT: control target
= control target key end

     0   :  { %10 = vsyncpa [#allocation4], 0  ;;  %s246_s0 = inlined_call_operand.hbm [shape: f32[2,256], index: 0, kind: input, shape index: {}]   ;;  %s247_s1 = inlined_call_operand.vmem [shape: f32[2,256], index: 1, kind: input, shape index: {}]   ;;  %s248_s2 = inlined_call_operand.vmem [shape: f32[1,256], index: 2, kind: input, shape index: {}]   ;;  %s249_s3 = inlined_call_operand.<no memory space> [shape: f32[1,1], index: 3, kind: input, shape index: {}]   ;;  %s250_s4 = inlined_call_operand.vmem [shape: f32[2,1], index: 4, kind: output, shape index: {}]  }
   0x1   :  { %15 = vsyncadd [#allocation4], 192  ;;  %s184_s15 = smov [#allocation3]   ;;  %s160_s19 = scalar_lea.hbm %s246_s0, 64 }
   0x2   :  { %s16_s16 = sshll.u32 %s184_s15, 4  ;;  %p161_p0 = scmp.ne.s32.totalorder %s246_s0, %s160_s19  ;;  %s17_s16 = int_to_ptr.vmem [resolvable:$true] %s16_s16 }
   0x3   :  { %p164_p1 = scmp.lt.u32.totalorder %s160_s19, %s246_s0 }
   0x5   :  { %p166_p2 = pnand %p164_p1, %p161_p0 }
   0x7   :  { %169 = shalt.err (!%p166_p2)
}
   0x8   :  { %s170_s24 = scalar_lea.vmem %s17_s16, 64  ;;  %s174_s25 = scalar_lea.vmem %s17_s16, 256 }
   0x9   :  { %p171_p3 = scmp.ne.s32.totalorder %s17_s16, %s170_s24  ;;  %p175_p4 = scmp.lt.s32.totalorder %s17_s16, %s17_s16 }
   0xa   :  { %p176_p5 = scmp.lt.s32.totalorder %s174_s25, %s170_s24 }
   0xc   :  { %p177_p6 = por %p176_p5, %p175_p4 }
   0xe   :  { %p178_p7 = pnand %p177_p6, %p171_p3 }
  0x10   :  { %181 = shalt.err (!%p178_p7)
}
  0x11   :  { %s185_s26 = smov 64   ;;  %s186_s27 = smov 4  }
  0x12   :  { %22 = dma.hbm_to_vmem [thread:$0]  %s246_s0, 64, %s17_s16, [#allocation4], %s185_s26, %s185_s26, %s186_s27  }
  0x13   :  { %182 = dma.done.wait [#allocation4], 256  }
  0x14   :  { %183 = vsyncadd [#allocation4], 4294967040  ;;  %v50_v0 = vlaneseq  ;;  %v187_v1 = vmov 1983009808   ;;  %v32_v7 = vld [vmem:[#allocation3] sm:$0xf]  ;;  %v112_v44 = vstv %s249_s3 }
  0x15   :  { %v61_v2 = vunpack.c.l.s4 %v187_v1  ;;  %v33_v8 = vld [vmem:[#allocation3 + $0x4] sm:$0xf]  ;;  %v34_v9 = vld [vmem:[#allocation3 + $0x8] sm:$0xf]  ;;  %v35_v10 = vld [vmem:[#allocation3 + $0xc] sm:$0xf] }
  0x16   :  { %v51_v3 = vshrl.u32 %v50_v0, 7  ;;  %v36_v11 = vld [vmem:[%s247_s1] sm:$0xf]  ;;  %v37_v12 = vld [vmem:[%s247_s1 + $0x4] sm:$0xf]  ;;  %vm114_vm0 = vcmask 7168  }
  0x17   :  { %v62_v4 = vunpack.c.0.s8 %v61_v2  ;;  %v38_v13 = vld [vmem:[%s247_s1 + $0x8] sm:$0xf]  ;;  %v39_v14 = vld [vmem:[%s247_s1 + $0xc] sm:$0xf]  ;;  %v40_v15 = vsub.f32 %v32_v7, %v36_v11  ;;  %v41_v16 = vsub.f32 %v33_v8, %v37_v12  ;;  %v48_v17 = vld [vmem:[%s248_s2] sm:$0x3] }
  0x18   :  { %v52_v5 = vsub.s32 0, %v51_v3  ;;  %v56_v6 = vsub.s32 1, %v51_v3  ;;  %v42_v19 = vsub.f32 %v34_v9, %v38_v13  ;;  %v43_v20 = vsub.f32 %v35_v10, %v39_v14 }
  0x19   :  { %v65_v18 = vsub.s32 %v62_v4, %v51_v3  ;;  %v44_v23 = vand.u32 2147483647, %v40_v15  ;;  %v45_v27 = vand.u32 2147483647, %v41_v16 }
  0x1a   :  { %v53_v21 = vrot.slane %v48_v17, %v52_v5  ;;  %v57_v22 = vrot.slane %v48_v17, %v56_v6  ;;  %v46_v24 = vand.u32 2147483647, %v42_v19  ;;  %v47_v28 = vand.u32 2147483647, %v43_v20 }
  0x1c   :  { %v58_v25 = vcombine.low %v53_v21, %v57_v22  ;;  %v59_v26 = vcombine.high %v53_v21, %v57_v22 }
  0x1e   :  { %v66_v29 = vrot.slane %v58_v25, %v65_v18  ;;  %v73_v30 = vrot.slane %v59_v26, %v65_v18 }
  0x20   :  { %v74_v31 = vcombine.high %v66_v29, %v66_v29  ;;  %v75_v32 = vcombine.high %v73_v30, %v73_v30  ;;  %v80_v33 = vmul.f32 %v66_v29, %v44_v23  ;;  %v82_v34 = vmul.f32 %v73_v30, %v46_v24 }
  0x22   :  { %v81_v35 = vmul.f32 %v74_v31, %v45_v27  ;;  %v83_v36 = vmul.f32 %v75_v32, %v47_v28 }
  0x24   :  { %v88_v37 = vcombine.low %v80_v33, %v81_v35  ;;  %v89_v38 = vcombine.low %v82_v34, %v83_v36 }
  0x26   :  { %v96_v39 = vrot.slane %v88_v37, %v65_v18  ;;  %v103_v40 = vrot.slane %v89_v38, %v65_v18 }
  0x28   :  { %v104_v41 = vcombine.low %v96_v39, %v103_v40  ;;  %v105_v42 = vcombine.high %v96_v39, %v103_v40 }
  0x2a   :  { %v108_v43 = vadd.f32 %v105_v42, %v104_v41 }
  0x2c   :  { %109 = vadd.xlane.f32.xlu0 %v108_v43 }
  0xb9   :  { %v110_v45 = vpop.xlane.xlu0 %109 }
  0xba   :  { %v113_v46 = vadd.f32 %v112_v44, %v110_v45 }
  0xbc   :  { %115 = vst.msk [vmem:[#allocation5] sm:$0xff] %vm114_vm0, %v113_v46 }
  0xc3   :  { %v133_v47 = vld [vmem:[#allocation5] sm:$0x3] }
  0xc4   :  { %134 = vst [vmem:[%s250_s4] sm:$0x3] %v133_v47 }
  0xc5   :  { %151 = vsyncpa [#allocation4], 1 }

</bundles_post_ra>
